<compile_context>
chip_gen: v7x
topology: tpu7x:2x2x1
jax: 0.10.0
libtpu: 0.0.40
codegen_flags: <defaults>
</compile_context>

<pallas_src>
import functools
import math

import jax
import jax.numpy as jnp
from jax.experimental import pallas as pl
from jax.experimental.pallas import tpu as pltpu


HIDDEN = 768
NUM_HEADS = 12
HEAD_DIM = HIDDEN // NUM_HEADS
FFN = 3072
NUM_LAYERS = 2
VOCAB = 128
MAX_POS = 64
LN_EPS = 1e-12


def _pick_tm(m):
    """Row-tile size: multiple of 8, prefer >=2 grid steps (keeps both v7x TCs busy)."""
    for tm in (256, 128, 64, 32, 16, 8):
        if m % tm == 0 and m // tm >= 2:
            return tm
    return m


def _gelu(x):
    # TODO(synk): HF BERT uses exact erf-GELU; tanh approximation used here for a
    # simple, Mosaic-safe elementwise lowering (tiny numeric difference).
    return 0.5 * x * (1.0 + jnp.tanh(0.7978845608028654 * (x + 0.044715 * x * x * x)))


def _layernorm(z, g, b, eps):
    mu = jnp.mean(z, axis=-1, keepdims=True)
    zc = z - mu
    var = jnp.mean(zc * zc, axis=-1, keepdims=True)
    return zc * jax.lax.rsqrt(var + eps) * g + b


# ----------------------------------------------------------------------------
# Kernel 1: embedding LayerNorm (no residual)
# ----------------------------------------------------------------------------
def _ln_kernel(x_ref, g_ref, b_ref, o_ref, *, eps):
    o_ref[...] = _layernorm(x_ref[...], g_ref[...], b_ref[...], eps).astype(o_ref.dtype)


def pallas_layernorm(x, gamma, beta, eps=LN_EPS):
    M, H = x.shape
    tm = _pick_tm(M)
    kernel = functools.partial(_ln_kernel, eps=eps)
    return pl.pallas_call(
        kernel,
        out_shape=jax.ShapeDtypeStruct((M, H), jnp.float32),
        grid_spec=pltpu.PrefetchScalarGridSpec(
            num_scalar_prefetch=0,
            grid=(M // tm,),
            in_specs=[
                pl.BlockSpec((tm, H), lambda i: (i, 0)),
                pl.BlockSpec((1, H), lambda i: (0, 0)),
                pl.BlockSpec((1, H), lambda i: (0, 0)),
            ],
            out_specs=pl.BlockSpec((tm, H), lambda i: (i, 0)),
        ),
        compiler_params=pltpu.CompilerParams(dimension_semantics=("parallel",)),
    )(x, gamma.reshape(1, H), beta.reshape(1, H))


# ----------------------------------------------------------------------------
# Kernel 2: fused attention block
#   qkv = x @ Wqkv + b; per-head softmax(q k^T * scale + mask) v (heads = 64-lane
#   slices of the hidden axis); ctx @ Wo + bo; residual add; LayerNorm.
# ----------------------------------------------------------------------------
def _attn_block_kernel(x_ref, wqkv_ref, bqkv_ref, m_ref, wo_ref, bo_ref,
                       g_ref, beta_ref, o_ref, *, scale, num_heads, head_dim, eps):
    x = x_ref[0]                                           # (S, H) f32
    xb = x.astype(jnp.bfloat16)
    qkv = jnp.dot(xb, wqkv_ref[...],
                  preferred_element_type=jnp.float32) + bqkv_ref[...]   # (S, 3H) f32
    mask = m_ref[0]                                        # (1, S) additive key mask
    hidden = num_heads * head_dim

    ctx_parts = []
    for h in range(num_heads):                             # unrolled; heads are lane slices
        lo = h * head_dim
        q_h = qkv[:, lo:lo + head_dim].astype(jnp.bfloat16)
        k_h = qkv[:, hidden + lo:hidden + lo + head_dim].astype(jnp.bfloat16)
        v_h = qkv[:, 2 * hidden + lo:2 * hidden + lo + head_dim].astype(jnp.bfloat16)
        # contract on last dims -> no explicit transpose of k
        s = jax.lax.dot_general(q_h, k_h, (((1,), (1,)), ((), ())),
                                preferred_element_type=jnp.float32) * scale + mask
        s = s - jnp.max(s, axis=-1, keepdims=True)
        p = jnp.exp(s)
        p = p * pl.reciprocal(jnp.sum(p, axis=-1, keepdims=True), approx=True)
        ctx_parts.append(jnp.dot(p.astype(jnp.bfloat16), v_h,
                                 preferred_element_type=jnp.float32))
    ctx = jnp.concatenate(ctx_parts, axis=-1)              # (S, H) f32

    attn_out = jnp.dot(ctx.astype(jnp.bfloat16), wo_ref[...],
                       preferred_element_type=jnp.float32) + bo_ref[...]
    z = attn_out + x                                       # residual
    o_ref[0] = _layernorm(z, g_ref[...], beta_ref[...], eps).astype(o_ref.dtype)


def pallas_attention_block(x, mask3, wqkv, bqkv, wo, bo, gamma, beta):
    """x: (B, S, H) f32; mask3: (B, 1, S) additive; weights bf16 -> (B, S, H) f32."""
    B, S, H = x.shape
    kernel = functools.partial(
        _attn_block_kernel, scale=1.0 / math.sqrt(HEAD_DIM),
        num_heads=NUM_HEADS, head_dim=HEAD_DIM, eps=LN_EPS)
    return pl.pallas_call(
        kernel,
        out_shape=jax.ShapeDtypeStruct((B, S, H), jnp.float32),
        grid_spec=pltpu.PrefetchScalarGridSpec(
            num_scalar_prefetch=0,
            grid=(B,),
            in_specs=[
                pl.BlockSpec((1, S, H), lambda b: (b, 0, 0)),
                pl.BlockSpec((H, 3 * H), lambda b: (0, 0)),
                pl.BlockSpec((1, 3 * H), lambda b: (0, 0)),
                pl.BlockSpec((1, 1, S), lambda b: (b, 0, 0)),
                pl.BlockSpec((H, H), lambda b: (0, 0)),
                pl.BlockSpec((1, H), lambda b: (0, 0)),
                pl.BlockSpec((1, H), lambda b: (0, 0)),
                pl.BlockSpec((1, H), lambda b: (0, 0)),
            ],
            out_specs=pl.BlockSpec((1, S, H), lambda b: (b, 0, 0)),
        ),
        compiler_params=pltpu.CompilerParams(
            dimension_semantics=("parallel",),
            vmem_limit_bytes=32 * 1024 * 1024),
    )(x, wqkv, bqkv.reshape(1, 3 * H), mask3, wo,
      bo.reshape(1, H), gamma.reshape(1, H), beta.reshape(1, H))


# ----------------------------------------------------------------------------
# Kernel 3: fused FFN block: GELU(x @ W1 + b1) @ W2 + b2 + residual -> LayerNorm
# ----------------------------------------------------------------------------
def _ffn_block_kernel(x_ref, w1_ref, b1_ref, w2_ref, b2_ref, g_ref, beta_ref,
                      o_ref, *, eps):
    x = x_ref[...]                                         # (tm, H) f32
    h1 = jnp.dot(x.astype(jnp.bfloat16), w1_ref[...],
                 preferred_element_type=jnp.float32) + b1_ref[...]
    h1 = _gelu(h1)
    h2 = jnp.dot(h1.astype(jnp.bfloat16), w2_ref[...],
                 preferred_element_type=jnp.float32) + b2_ref[...]
    z = h2 + x                                             # residual
    o_ref[...] = _layernorm(z, g_ref[...], beta_ref[...], eps).astype(o_ref.dtype)


def pallas_ffn_block(x, w1, b1, w2, b2, gamma, beta):
    M, H = x.shape
    F = w1.shape[1]
    tm = _pick_tm(M)
    kernel = functools.partial(_ffn_block_kernel, eps=LN_EPS)
    return pl.pallas_call(
        kernel,
        out_shape=jax.ShapeDtypeStruct((M, H), jnp.float32),
        grid_spec=pltpu.PrefetchScalarGridSpec(
            num_scalar_prefetch=0,
            grid=(M // tm,),
            in_specs=[
                pl.BlockSpec((tm, H), lambda i: (i, 0)),
                pl.BlockSpec((H, F), lambda i: (0, 0)),
                pl.BlockSpec((1, F), lambda i: (0, 0)),
                pl.BlockSpec((F, H), lambda i: (0, 0)),
                pl.BlockSpec((1, H), lambda i: (0, 0)),
                pl.BlockSpec((1, H), lambda i: (0, 0)),
                pl.BlockSpec((1, H), lambda i: (0, 0)),
            ],
            out_specs=pl.BlockSpec((tm, H), lambda i: (i, 0)),
        ),
        compiler_params=pltpu.CompilerParams(
            dimension_semantics=("parallel",),
            vmem_limit_bytes=32 * 1024 * 1024),   # bf16 W1+W2 double-buffered ~18 MiB
    )(x, w1, b1.reshape(1, F), w2, b2.reshape(1, H),
      gamma.reshape(1, H), beta.reshape(1, H))


# ----------------------------------------------------------------------------
# Kernel 4: fused pooler + regressor:
#   out = tanh(cls @ Wpool + bpool) @ Wreg_pad + breg_pad   (lane-dense 128-wide out)
# ----------------------------------------------------------------------------
def _pool_reg_kernel(cls_ref, wp_ref, bp_ref, wr_ref, br_ref, o_ref):
    c = cls_ref[...].astype(jnp.bfloat16)
    pooled = jnp.tanh(jnp.dot(c, wp_ref[...],
                              preferred_element_type=jnp.float32) + bp_ref[...])
    out = jnp.dot(pooled.astype(jnp.bfloat16), wr_ref[...],
                  preferred_element_type=jnp.float32) + br_ref[...]
    o_ref[...] = out.astype(o_ref.dtype)


def pallas_pool_regressor(cls, wpool, bpool, wreg_pad, breg_pad):
    B, H = cls.shape
    NP = wreg_pad.shape[1]
    return pl.pallas_call(
        _pool_reg_kernel,
        out_shape=jax.ShapeDtypeStruct((B, NP), jnp.float32),
        grid_spec=pltpu.PrefetchScalarGridSpec(
            num_scalar_prefetch=0,
            grid=(1,),
            in_specs=[
                pl.BlockSpec((B, H), lambda i: (0, 0)),
                pl.BlockSpec((H, H), lambda i: (0, 0)),
                pl.BlockSpec((1, H), lambda i: (0, 0)),
                pl.BlockSpec((H, NP), lambda i: (0, 0)),
                pl.BlockSpec((1, NP), lambda i: (0, 0)),
            ],
            out_specs=pl.BlockSpec((B, NP), lambda i: (0, 0)),
        ),
    )(cls, wpool, bpool.reshape(1, H), wreg_pad, breg_pad.reshape(1, NP))


# ----------------------------------------------------------------------------
# Model: deterministic parameter init + forward
# ----------------------------------------------------------------------------
def init_params(key):
    std = 0.02
    p = {}
    keys = iter(jax.random.split(key, 32))

    p["word_emb"] = jax.random.normal(next(keys), (VOCAB, HIDDEN), jnp.float32) * std
    p["pos_emb"] = jax.random.normal(next(keys), (MAX_POS, HIDDEN), jnp.float32) * std
    p["type_emb"] = jax.random.normal(next(keys), (2, HIDDEN), jnp.float32) * std
    p["emb_ln_g"] = jnp.ones((HIDDEN,), jnp.float32)
    p["emb_ln_b"] = jnp.zeros((HIDDEN,), jnp.float32)

    layers = []
    for _ in range(NUM_LAYERS):
        wq = jax.random.normal(next(keys), (HIDDEN, HIDDEN), jnp.float32) * std
        wk = jax.random.normal(next(keys), (HIDDEN, HIDDEN), jnp.float32) * std
        wv = jax.random.normal(next(keys), (HIDDEN, HIDDEN), jnp.float32) * std
        lp = {
            # fused Q|K|V projection weight, stored bf16 for MXU
            "Wqkv": jnp.concatenate([wq, wk, wv], axis=1).astype(jnp.bfloat16),
            "bqkv": jnp.zeros((3 * HIDDEN,), jnp.float32),
            "Wo": (jax.random.normal(next(keys), (HIDDEN, HIDDEN), jnp.float32) * std
                   ).astype(jnp.bfloat16),
            "bo": jnp.zeros((HIDDEN,), jnp.float32),
            "ln1_g": jnp.ones((HIDDEN,), jnp.float32),
            "ln1_b": jnp.zeros((HIDDEN,), jnp.float32),
            "W1": (jax.random.normal(next(keys), (HIDDEN, FFN), jnp.float32) * std
                   ).astype(jnp.bfloat16),
            "b1": jnp.zeros((FFN,), jnp.float32),
            "W2": (jax.random.normal(next(keys), (FFN, HIDDEN), jnp.float32) * std
                   ).astype(jnp.bfloat16),
            "b2": jnp.zeros((HIDDEN,), jnp.float32),
            "ln2_g": jnp.ones((HIDDEN,), jnp.float32),
            "ln2_b": jnp.zeros((HIDDEN,), jnp.float32),
        }
        layers.append(lp)
    p["layers"] = layers

    p["Wpool"] = (jax.random.normal(next(keys), (HIDDEN, HIDDEN), jnp.float32) * std
                  ).astype(jnp.bfloat16)
    p["bpool"] = jnp.zeros((HIDDEN,), jnp.float32)
    wreg = jax.random.normal(next(keys), (HIDDEN, 1), jnp.float32) * std
    # pad the (768,1) regressor weight into a lane-dense (768,128) slab; col 0 is real
    p["Wreg_pad"] = jnp.zeros((HIDDEN, 128), jnp.float32).at[:, :1].set(wreg).astype(jnp.bfloat16)
    p["breg_pad"] = jnp.zeros((128,), jnp.float32)
    return p


def regressor_transformer_forward(params, input_ids, attention_masks):
    """input_ids: (B, S) int32; attention_masks: (B, S) {0,1} -> (B, 1) float32."""
    B, S = input_ids.shape

    # --- embeddings (gather = glue in plain JAX), then no-residual LayerNorm ---
    h = (params["word_emb"][input_ids]
         + params["pos_emb"][:S][None, :, :]
         + params["type_emb"][0][None, None, :]).astype(jnp.float32)
    h = h.reshape(B * S, HIDDEN)
    h = pallas_layernorm(h, params["emb_ln_g"], params["emb_ln_b"])

    # --- additive attention mask, one (1, S) row per batch (no per-head copies) ---
    mask3 = ((1.0 - attention_masks.astype(jnp.float32)) * -1e9)[:, None, :]  # (B,1,S)

    # --- transformer encoder layers (fused blocks) ---
    for lp in params["layers"]:
        h = pallas_attention_block(h.reshape(B, S, HIDDEN), mask3,
                                   lp["Wqkv"], lp["bqkv"], lp["Wo"], lp["bo"],
                                   lp["ln1_g"], lp["ln1_b"]).reshape(B * S, HIDDEN)
        h = pallas_ffn_block(h, lp["W1"], lp["b1"], lp["W2"], lp["b2"],
                             lp["ln2_g"], lp["ln2_b"])

    # --- pooler (tanh(Linear(h[:,0,:]))) + regressor Linear(768,1), fused ---
    cls = h.reshape(B, S, HIDDEN)[:, 0, :]                                   # (B, 768)
    out = pallas_pool_regressor(cls, params["Wpool"], params["bpool"],
                                params["Wreg_pad"], params["breg_pad"])      # (B, 128)
    return out[:, :1]                                                        # (B, 1)


if __name__ == "__main__":
    key = jax.random.PRNGKey(0)
    k_ids, k_params = jax.random.split(key)

    B, S = 2, 8
    input_ids = jax.random.randint(k_ids, (B, S), 0, VOCAB, dtype=jnp.int32)
    attention_masks = jnp.ones((B, S), dtype=jnp.int32).at[1, 6:].set(0)     # ragged mask

    params = init_params(k_params)

    out = regressor_transformer_forward(params, input_ids, attention_masks)
    out = jax.block_until_ready(out)
    assert out.shape == (B, 1) and out.dtype == jnp.float32
    assert bool(jnp.all(jnp.isfinite(out)))
    print("KERNEL_OK")
</pallas_src>

<mosaic_0001>
module attributes {stable_mosaic.version = 11 : i64} {
  func.func @_ln_kernel(%arg0: i32, %arg1: memref<8x768xf32, #tpu.memory_space<vmem>>, %arg2: memref<1x768xf32, #tpu.memory_space<vmem>>, %arg3: memref<1x768xf32, #tpu.memory_space<vmem>>, %arg4: memref<8x768xf32, #tpu.memory_space<vmem>>) attributes {dimension_semantics = [#tpu.dimension_semantics<parallel>], iteration_bounds = array<i64: 2>, scalar_prefetch = 0 : i64, scratch_operands = 0 : i64, tpu.core_type = #tpu.core_type<tc>, window_params = [{transform_indices = @transform_0, window_bounds = array<i64: 8, 768>}, {pipeline_mode = #tpu.pipeline_mode<synchronous>, transform_indices = @transform_1, window_bounds = array<i64: 1, 768>}, {pipeline_mode = #tpu.pipeline_mode<synchronous>, transform_indices = @transform_2, window_bounds = array<i64: 1, 768>}, {transform_indices = @transform_3, window_bounds = array<i64: 8, 768>}]} {
    %c0 = arith.constant 0 : index
    %c0_0 = arith.constant 0 : index
    %0 = vector.load %arg1[%c0, %c0_0] : memref<8x768xf32, #tpu.memory_space<vmem>>, vector<8x768xf32>
    %c0_1 = arith.constant 0 : index
    %c0_2 = arith.constant 0 : index
    %1 = vector.load %arg2[%c0_1, %c0_2] : memref<1x768xf32, #tpu.memory_space<vmem>>, vector<1x768xf32>
    %c0_3 = arith.constant 0 : index
    %c0_4 = arith.constant 0 : index
    %2 = vector.load %arg3[%c0_3, %c0_4] : memref<1x768xf32, #tpu.memory_space<vmem>>, vector<1x768xf32>
    %cst = arith.constant dense<0.000000e+00> : vector<8xf32>
    %3 = vector.multi_reduction <add>, %0, %cst [1] : vector<8x768xf32> to vector<8xf32>
    %4 = vector.shape_cast %3 : vector<8xf32> to vector<8x1xf32>
    %cst_5 = arith.constant 7.680000e+02 : f32
    %5 = vector.broadcast %cst_5 : f32 to vector<8x1xf32>
    %6 = arith.divf %4, %5 : vector<8x1xf32>
    %7 = vector.broadcast %6 : vector<8x1xf32> to vector<8x768xf32>
    %8 = arith.subf %0, %7 : vector<8x768xf32>
    %9 = arith.mulf %8, %8 : vector<8x768xf32>
    %cst_6 = arith.constant dense<0.000000e+00> : vector<8xf32>
    %10 = vector.multi_reduction <add>, %9, %cst_6 [1] : vector<8x768xf32> to vector<8xf32>
    %11 = vector.shape_cast %10 : vector<8xf32> to vector<8x1xf32>
    %cst_7 = arith.constant 7.680000e+02 : f32
    %12 = vector.broadcast %cst_7 : f32 to vector<8x1xf32>
    %13 = arith.divf %11, %12 : vector<8x1xf32>
    %cst_8 = arith.constant 9.99999996E-13 : f32
    %14 = vector.broadcast %cst_8 : f32 to vector<8x1xf32>
    %15 = arith.addf %13, %14 : vector<8x1xf32>
    %16 = math.rsqrt %15 : vector<8x1xf32>
    %17 = vector.broadcast %16 : vector<8x1xf32> to vector<8x768xf32>
    %18 = arith.mulf %8, %17 : vector<8x768xf32>
    %19 = vector.broadcast %1 : vector<1x768xf32> to vector<8x768xf32>
    %20 = arith.mulf %18, %19 : vector<8x768xf32>
    %21 = vector.broadcast %2 : vector<1x768xf32> to vector<8x768xf32>
    %22 = arith.addf %20, %21 : vector<8x768xf32>
    %c0_9 = arith.constant 0 : index
    %c0_10 = arith.constant 0 : index
    %23 = vector.load %arg4[%c0_9, %c0_10] : memref<8x768xf32, #tpu.memory_space<vmem>>, vector<8x768xf32>
    tpu.vector_store %arg4[%c0_9, %c0_10], %22 {strides = array<i32>} : memref<8x768xf32, #tpu.memory_space<vmem>>, vector<8x768xf32>,
    return
  }
  func.func @transform_0(%arg0: i32) -> (i32, i32) {
    %c0_i32 = arith.constant 0 : i32
    %c0_i32_0 = arith.constant 0 : i32
    return %arg0, %c0_i32 : i32, i32
  }
  func.func @transform_1(%arg0: i32) -> (i32, i32) {
    %c0_i32 = arith.constant 0 : i32
    %c0_i32_0 = arith.constant 0 : i32
    %c0_i32_1 = arith.constant 0 : i32
    return %c0_i32, %c0_i32_0 : i32, i32
  }
  func.func @transform_2(%arg0: i32) -> (i32, i32) {
    %c0_i32 = arith.constant 0 : i32
    %c0_i32_0 = arith.constant 0 : i32
    %c0_i32_1 = arith.constant 0 : i32
    return %c0_i32, %c0_i32_0 : i32, i32
  }
  func.func @transform_3(%arg0: i32) -> (i32, i32) {
    %c0_i32 = arith.constant 0 : i32
    %c0_i32_0 = arith.constant 0 : i32
    return %arg0, %c0_i32 : i32, i32
  }
}

</mosaic_0001>

<bundles_post_ra>
// kernel: tpu_custom_call.1
= control target key start
LH: loop header
LB: loop body
LE: loop exit
PB: predicated region body
PF: predicated region fallthrough
CT: control target
= control target key end

     0   :  { %8 = vsyncpa [#allocation3], 0  ;;  %s854_s0 = inlined_call_operand.hbm [shape: f32[16,768], index: 0, kind: input, shape index: {}]   ;;  %s855_s1 = inlined_call_operand.hbm [shape: f32[1,768], index: 1, kind: input, shape index: {}]   ;;  %s856_s2 = inlined_call_operand.vmem [shape: f32[1,768], index: 2, kind: input, shape index: {}]   ;;  %s857_s3 = inlined_call_operand.hbm [shape: f32[16,768], index: 3, kind: output, shape index: {}]  }
   0x1   :  { %10 = vsyncpa [#allocation3 + $0x1], 0 }
   0x2   :  { %11 = vsyncpa [#allocation6], 0 }
   0x3   :  { %12 = vsyncpa [#allocation4], 0 }
   0x4   :  { %14 = vsyncpa [#allocation4 + $0x1], 0  ;;  %s646_s12 = smov 0   ;;  %s648_s13 = smov 0  }
   0x5   :  { %s650_s14 = smov 0   ;;  %s652_s15 = smov 0  }
   0x6 LB: > { %s667_s16 = sadd.s32 4294967295, %s621_s15   ;;  %s420_s17 = sadd.s32 4294967294, %s621_s15   ;;  %s621_s15 = sphi %s652_s15, %s881_s15   ;;  %s617_s14 = sphi %s650_s14, %s880_s14   ;;  %s613_s13 = sphi %s648_s13, %s879_s13   ;;  %s609_s12 = sphi %s646_s12, %s878_s12  }
   0x7   : > { %p40_p0 = scmp.ne.s32.totalorder %s613_s13, %s609_s12  ;;  %p858_p1 = scmp.eq.s32.totalorder %s667_s16, 0 }
   0x8   : > { %p112_p3 = scmp.eq.s32.totalorder %s420_s17, 1  ;;  %p421_p5 = scmp.ge.s32.totalorder %s621_s15, 1 }
   0x9   : > { %p676_p4 = por %p858_p1, %p40_p0  ;;  %p119_p7 = scmp.lt.s32.totalorder %s621_s15, 3 }
   0xa   : > { %p681_p6 = por %p112_p3, %p40_p0  ;;  %s623_s21 = smov [#allocation5]  }
   0xb   : > { %s861_s18 = scalar_select %p676_p4, 1, 0 }
   0xc   : > { %s862_s19 = scalar_select %p681_p6, 1, 0 }
   0xd   : > { %p686_p8 = pnand %p421_p5, %p119_p7  ;;  %s132_s22 = sshll.u32 %s623_s21, 4  ;;  %s133_s22 = int_to_ptr.vmem [resolvable:$true] %s132_s22 }
   0xe   : > { %s694_s23 = sadd.s32 1, %s621_s15   ;;  %s27_s27 = sadd.s32 1, %s617_s14 }
   0xf   : > { %s863_s20 = scalar_select %p686_p8, 1, 0 }
  0x10   : > { %p442_p10 = pneg %p686_p8  ;;  %s24_s25 = ssub.s32 %s621_s15, %s694_s23 }
  0x11   : > { %p704_p12 = scmp.eq.s32.totalorder %s24_s25, 0  ;;  %s493_s30 = scalar_lea.hbm %s855_s1, 96 }
  0x12   : > { %p698_p11 = pnand %p442_p10, %p858_p1  ;;  %p494_p0 = scmp.ne.s32.totalorder %s855_s1, %s493_s30 }
  0x13   : > { %s865_s26 = scalar_select %p704_p12, 1, 0 }
  0x14   : > { %p495_p3 = pneg %p698_p11  ;;  %p500_p10 = scmp.lt.u32.totalorder %s493_s30, %s855_s1 }
  0x16   : > { %p496_p5 = pnand %p495_p3, %p494_p0 }
  0x18   : > { %p497_p7 = pneg %p496_p5 }
  0x1a   : > { %p502_p9 = pnand %p500_p10, %p497_p7 }
  0x1c   : > { %505 = shalt.err (!%p502_p9)
}
  0x1d   : > { %s506_s8 = scalar_lea.vmem %s133_s22, 96  ;;  %p514_p6 = scmp.lt.s32.totalorder %s133_s22, %s133_s22 }
  0x1e   : > { %p507_p1 = scmp.ne.s32.totalorder %s133_s22, %s506_s8  ;;  %p515_p4 = scmp.lt.s32.totalorder %s506_s8, %s506_s8 }
  0x20   : > { %p509_p2 = pnand %p507_p1, %p495_p3  ;;  %p516_p8 = por %p515_p4, %p514_p6 }
  0x22   : > { %p510_p13 = pneg %p509_p2 }
  0x24   : > { %p517_p12 = pnand %p516_p8, %p510_p13 }
  0x26   : > { %520 = shalt.err (!%p517_p12)
}
  0x27   : > { %445 = dma.hbm_to_vmem [thread:$0]  (!%p698_p11), %s855_s1, 96, %s133_s22, [#allocation6]  }
  0x28   : > { %p866_p1 = scmp.ne.s32.totalorder %s865_s26, 0  ;;  %p35_p2 = scmp.eq.s32.totalorder %s621_s15, 0 }
  0x29   : > { %p867_p4 = scmp.ne.s32.totalorder %s617_s14, %s613_s13  ;;  %p868_p6 = scmp.eq.s32.totalorder %s667_s16, 1 }
  0x2a   : > { %s730_s11 = scalar_select %p866_p1, %s617_s14, %s27_s27  }
  0x2b   : > { %p738_p8 = por %p868_p6, %p867_p4  ;;  %p455_p9 = scmp.lt.s32.totalorder %s621_s15, 2 }
  0x2c   : > { %s146_s21 = sand.u32 1, %s617_s14   ;;  %p870_p12 = pmov %p867_p4 }
  0x2d   : > { %s430_s24 = smul.u32 48, %s146_s21  ;;  %s147_s4 = scalar_lea.sflag [#allocation3], %s146_s21 }
  0x2e   : > { %p36_p13 = por %p35_p2, %p870_p12  ;;  %s431_s25 = smul.u32 768, %s621_s15 }
  0x2f   : > { %s150_s29 = scalar_lea.vmem [#allocation2], %s430_s24  ;;  %s526_s8 = scalar_lea.hbm %s854_s0, 1536 }
  0x30   : > { %p748_p0 = pnand %p455_p9, %p36_p13  ;;  %s755_s27 = scalar_lea.hbm %s854_s0, %s431_s25 }
  0x31   : > { %s158_s30 = sshll.u32 %s150_s29, 4  ;;  %s521_s5 = scalar_lea.hbm %s755_s27, 768  ;;  %s757_s30 = int_to_ptr.vmem [resolvable:$true] %s158_s30 }
  0x32   : > { %p522_p11 = scmp.ne.s32.totalorder %s755_s27, %s521_s5  ;;  %p523_p3 = pneg %p748_p0 }
  0x33   : > { %p527_p10 = scmp.lt.u32.totalorder %s755_s27, %s854_s0  ;;  %p528_p1 = scmp.lt.u32.totalorder %s526_s8, %s521_s5 }
  0x34   : > { %p524_p5 = pnand %p523_p3, %p522_p11  ;;  %p530_p4 = scmp.lt.u32.totalorder %s521_s5, %s755_s27 }
  0x35   : > { %p529_p2 = por %p528_p1, %p527_p10 }
  0x36   : > { %p525_p7 = pneg %p524_p5 }
  0x37   : > { %p531_p6 = por %p530_p4, %p529_p2 }
  0x39   : > { %p532_p9 = pnand %p531_p6, %p525_p7 }
  0x3b   : > { %535 = shalt.err (!%p532_p9)
}
  0x3c   : > { %s536_s21 = scalar_lea.vmem %s757_s30, 768  ;;  %s624_s24 = smov [#allocation2]  }
  0x3d   : > { %p537_p12 = scmp.ne.s32.totalorder %s757_s30, %s536_s21  ;;  %s541_s25 = sshll.u32 %s624_s24, 4  ;;  %s542_s25 = int_to_ptr.vmem [resolvable:$false] %s541_s25 }
  0x3e   : > { %s543_s22 = scalar_lea.vmem %s542_s25, 1536  ;;  %p544_p5 = scmp.lt.s32.totalorder %s757_s30, %s542_s25 }
  0x3f   : > { %p539_p13 = pnand %p537_p12, %p523_p3  ;;  %p545_p10 = scmp.lt.s32.totalorder %s543_s22, %s536_s21 }
  0x41   : > { %p540_p11 = pneg %p539_p13  ;;  %p546_p1 = por %p545_p10, %p544_p5 }
  0x43   : > { %p547_p2 = pnand %p546_p1, %p540_p11 }
  0x45   : > { %550 = shalt.err (!%p547_p2)
}
  0x46   : > { %449 = dma.hbm_to_vmem [thread:$0]  (!%p748_p0), %s755_s27, 768, %s757_s30, %s147_s4  }
  0x47   : > { %p872_p7 = scmp.ne.s32.totalorder %s863_s20, 0 }
  0x48   : > { %s787_s26 = sand.u32 (!%p872_p7), 1, %s613_s13   ;;  %p873_p3 = scmp.ne.s32.totalorder (!%p872_p7), %s861_s18, 0 }
  0x49   : > { %167 = sbr.rel (%p872_p7) target bundleno = 432 (0x1b0), region = 32  ;;  %s170_s5 = scalar_lea.sflag (!%p872_p7), [#allocation3], %s787_s26 }
  0x4a   : > { %s432_s29 = smul.u32 (!%p872_p7), 48, %s787_s26 }
  0x4c   : > { %s173_s6 = scalar_lea.vmem (!%p872_p7), [#allocation2], %s432_s29 }
  0x50   : > { %596 = dma.done.wait (%p873_p3), %s170_s5, 768  }
  0x51   : > { %598 = vsyncadd (%p873_p3), %s170_s5, 4294966528  ;;  %p874_p0 = scmp.eq.s32.totalorder %s667_s16, 0 }
  0x53   : > { %600 = dma.done.wait (%p874_p0), [#allocation6], 96   ;;  %p875_p4 = pmov %p874_p0 }
  0x54   : > { %v200_v0 = vld [vmem:[%s173_s6] sm:$0xff]  ;;  %v201_v1 = vld [vmem:[%s173_s6 + $0x8] sm:$0xff]  ;;  %v202_v2 = vld [vmem:[%s173_s6 + $0x10] sm:$0xff]  ;;  %v246_v32 = vlaneseq  ;;  %s433_s28 = smul.u32 768, %s667_s16  ;;  %s199_s27 = scalar_lea.vmem [#allocation7], %s432_s29 }
  0x55   : > { %602 = vsyncadd (%p875_p4), [#allocation6], 4294967200  ;;  %v208_v3 = vadd.f32 %v201_v1, %v200_v0  ;;  %v203_v4 = vld [vmem:[%s173_s6 + $0x18] sm:$0xff]  ;;  %v204_v6 = vld [vmem:[%s173_s6 + $0x20] sm:$0xff]  ;;  %s340_s30 = sshll.u32 %s199_s27, 4  ;;  %s326_s8 = scalar_lea.sflag [#allocation4], %s787_s26  ;;  %s812_s30 = int_to_ptr.vmem [resolvable:$true] %s340_s30 }
  0x56   : > { %v205_v8 = vld [vmem:[%s173_s6 + $0x28] sm:$0xff]  ;;  %v247_v34 = vshrl.u32 %v246_v32, 7  ;;  %v206_v37 = vld [vmem:[#allocation5] sm:$0x3f]  ;;  %s810_s16 = scalar_lea.hbm %s857_s3, %s433_s28  ;;  %s551_s9 = scalar_lea.vmem %s812_s30, 768 }
  0x57   : > { %v209_v5 = vadd.f32 %v208_v3, %v202_v2  ;;  %v207_v42 = vld [vmem:[%s856_s2] sm:$0x3f]  ;;  %p552_p6 = scmp.ne.s32.totalorder %s812_s30, %s551_s9  ;;  %s625_s10 = smov [#allocation7]  }
  0x58   : > { %v248_v35 = vsub.s32 0, %v247_v34  ;;  %v252_v36 = vsub.s32 1, %v247_v34  ;;  %v256_v38 = vsub.s32 2, %v247_v34  ;;  %v260_v39 = vsub.s32 3, %v247_v34  ;;  %s555_s21 = sshll.u32 %s625_s10, 4  ;;  %s556_s21 = int_to_ptr.vmem [resolvable:$false] %s555_s21 }
  0x59   : > { %v210_v7 = vadd.f32 %v209_v5, %v203_v4  ;;  %v264_v40 = vsub.s32 4, %v247_v34  ;;  %v268_v41 = vsub.s32 5, %v247_v34  ;;  %p553_p9 = pnand %p552_p6, %p738_p8  ;;  %s557_s24 = scalar_lea.vmem %s556_s21, 1536 }
  0x5a   : > { %v249_v43 = vrot.slane %v206_v37, %v248_v35  ;;  %v253_v44 = vrot.slane %v206_v37, %v252_v36  ;;  %v257_v45 = vrot.slane %v206_v37, %v256_v38  ;;  %v261_v46 = vrot.slane %v206_v37, %v260_v39  ;;  %p558_p13 = scmp.lt.s32.totalorder %s812_s30, %s556_s21  ;;  %p559_p11 = scmp.lt.s32.totalorder %s557_s24, %s551_s9 }
  0x5b   : > { %v211_v9 = vadd.f32 %v210_v7, %v204_v6  ;;  %v265_v47 = vrot.slane %v206_v37, %v264_v40  ;;  %v269_v48 = vrot.slane %v206_v37, %v268_v41  ;;  %v286_v50 = vrot.slane %v207_v42, %v248_v35  ;;  %p554_p12 = pneg %p553_p9 }
  0x5c   : > { %v290_v51 = vrot.slane %v207_v42, %v252_v36  ;;  %v294_v52 = vrot.slane %v207_v42, %v256_v38  ;;  %v298_v53 = vrot.slane %v207_v42, %v260_v39  ;;  %v302_v60 = vrot.slane %v207_v42, %v264_v40  ;;  %p560_p5 = por %p559_p11, %p558_p13 }
  0x5d   : > { %v212_v10 = vadd.f32 %v211_v9, %v205_v8  ;;  %v306_v61 = vrot.slane %v207_v42, %v268_v41 }
  0x5e   : > { %p561_p10 = pnand %p560_p5, %p554_p12 }
  0x5f   : > { %213 = vadd.xlane.f32.xlu0 %v212_v10 }
  0xec   : > { %v214_v11 = vpop.xlane.xlu0 %213 }
  0xed   : > { %v216_v12 = vmul.f32 0.0013020834, %v214_v11 }
  0xef   : > { %v217_v13 = vsub.f32 %v200_v0, %v216_v12  ;;  %v218_v14 = vsub.f32 %v201_v1, %v216_v12  ;;  %v219_v15 = vsub.f32 %v202_v2, %v216_v12  ;;  %v220_v16 = vsub.f32 %v203_v4, %v216_v12 }
  0xf0   : > { %v221_v19 = vsub.f32 %v204_v6, %v216_v12  ;;  %v222_v22 = vsub.f32 %v205_v8, %v216_v12 }
  0xf1   : > { %v223_v17 = vmul.f32 %v217_v13, %v217_v13  ;;  %v224_v18 = vmul.f32 %v218_v14, %v218_v14  ;;  %v225_v20 = vmul.f32 %v219_v15, %v219_v15  ;;  %v226_v23 = vmul.f32 %v220_v16, %v220_v16 }
  0xf2   : > { %v227_v25 = vmul.f32 %v221_v19, %v221_v19  ;;  %v228_v27 = vmul.f32 %v222_v22, %v222_v22 }
  0xf3   : > { %v229_v21 = vadd.f32 %v224_v18, %v223_v17 }
  0xf5   : > { %v230_v24 = vadd.f32 %v229_v21, %v225_v20 }
  0xf7   : > { %v231_v26 = vadd.f32 %v230_v24, %v226_v23 }
  0xf9   : > { %v232_v28 = vadd.f32 %v231_v26, %v227_v25 }
  0xfb   : > { %v233_v29 = vadd.f32 %v232_v28, %v228_v27 }
  0xfd   : > { %234 = vadd.xlane.f32.xlu0 %v233_v29 }
 0x18a   : > { %v235_v30 = vpop.xlane.xlu0 %234 }
 0x18b   : > { %v236_v31 = vmul.f32 0.0013020834, %v235_v30 }
 0x18d   : > { %v237_v33 = vadd.f32 1e-12, %v236_v31 }
 0x18f   : > { %491 = vrsqrt.f32 %v237_v33 }
 0x199   : > { %v492_v49 = vpop.eup %491 }
 0x19a   : > { %v239_v54 = vmul.f32 %v492_v49, %v217_v13  ;;  %v240_v55 = vmul.f32 %v492_v49, %v218_v14  ;;  %v241_v56 = vmul.f32 %v492_v49, %v219_v15  ;;  %v242_v57 = vmul.f32 %v492_v49, %v220_v16 }
 0x19b   : > { %v243_v58 = vmul.f32 %v492_v49, %v221_v19  ;;  %v244_v59 = vmul.f32 %v492_v49, %v222_v22 }
 0x19c   : > { %v276_v62 = vmul.f32 %v249_v43, %v239_v54  ;;  %v277_v63 = vmul.f32 %v253_v44, %v240_v55  ;;  %v278_v0 = vmul.f32 %v257_v45, %v241_v56  ;;  %v279_v1 = vmul.f32 %v261_v46, %v242_v57 }
 0x19d   : > { %v280_v2 = vmul.f32 %v265_v47, %v243_v58  ;;  %v281_v3 = vmul.f32 %v269_v48, %v244_v59 }
 0x19e   : > { %v313_v4 = vadd.f32 %v286_v50, %v276_v62  ;;  %v314_v5 = vadd.f32 %v290_v51, %v277_v63  ;;  %v315_v6 = vadd.f32 %v294_v52, %v278_v0  ;;  %v316_v7 = vadd.f32 %v298_v53, %v279_v1 }
 0x19f   : > { %v317_v8 = vadd.f32 %v302_v60, %v280_v2  ;;  %v318_v9 = vadd.f32 %v306_v61, %v281_v3 }
 0x1a0   : > { %319 = vst [vmem:[%s199_s27] sm:$0xff] %v313_v4  ;;  %320 = vst [vmem:[%s199_s27 + $0x8] sm:$0xff] %v314_v5 }
 0x1a1   : > { %321 = vst [vmem:[%s199_s27 + $0x10] sm:$0xff] %v315_v6  ;;  %322 = vst [vmem:[%s199_s27 + $0x18] sm:$0xff] %v316_v7 }
 0x1a2   : > { %323 = vst [vmem:[%s199_s27 + $0x20] sm:$0xff] %v317_v8  ;;  %324 = vst [vmem:[%s199_s27 + $0x28] sm:$0xff] %v318_v9 }
 0x1a3   : > { %564 = shalt.err (!%p561_p10)
}
 0x1a4   : > { %s565_s25 = scalar_lea.hbm %s810_s16, 768  ;;  %s569_s29 = scalar_lea.hbm %s857_s3, 1536 }
 0x1a5   : > { %p566_p1 = scmp.ne.s32.totalorder %s810_s16, %s565_s25  ;;  %p570_p3 = scmp.lt.u32.totalorder %s810_s16, %s857_s3 }
 0x1a6   : > { %p571_p0 = scmp.lt.u32.totalorder %s569_s29, %s565_s25  ;;  %p573_p6 = scmp.lt.u32.totalorder %s565_s25, %s810_s16 }
 0x1a7   : > { %p567_p2 = pnand %p566_p1, %p738_p8 }
 0x1a8   : > { %p572_p4 = por %p571_p0, %p570_p3 }
 0x1a9   : > { %p568_p7 = pneg %p567_p2 }
 0x1aa   : > { %p574_p9 = por %p573_p6, %p572_p4 }
 0x1ac   : > { %p575_p12 = pnand %p574_p9, %p568_p7 }
 0x1ae   : > { %578 = shalt.err (!%p575_p12)
}
 0x1af   : > { %440 = dma.vmem_to_hbm [thread:$0]  (%p738_p8), %s812_s30, 768, %s810_s16, %s326_s8  }
 0x1b0 PF: > { %s352_s18 = sand.u32 1, %s609_s12   ;;  %p876_p13 = scmp.ne.s32.totalorder %s862_s19, 0 }
 0x1b1   : > { %p877_p11 = scmp.ge.s32.totalorder %s621_s15, 2  ;;  %s353_s20 = scalar_lea.sflag [#allocation4], %s352_s18 }
 0x1b3   : > { %p451_p5 = pnand %p877_p11, %p876_p13 }
 0x1b5   : > { %604 = dma.done.wait (!%p451_p5), %s353_s20, 768  }
 0x1b6   : > { %606 = vsyncadd (!%p451_p5), %s353_s20, 4294966528  ;;  %p17_p10 = scmp.ge.s32.totalorder %s694_s23, 4   ;;  %s878_s12 = smov %s613_s13 }
 0x1b7   : > { %s879_s13 = smov %s617_s14  ;;  %s880_s14 = smov %s730_s11 }
 0x1b8   : > { %s881_s15 = smov %s694_s23  ;;  %19 = sbr.rel (!%p17_p10) target bundleno = 6 (0x6), region = 81 }
 0x1bf   :  { %358 = vsyncpa [#allocation3], 1 }
 0x1c0   :  { %360 = vsyncpa [#allocation3 + $0x1], 1 }
 0x1c1   :  { %361 = vsyncpa [#allocation6], 1 }
 0x1c2   :  { %362 = vsyncpa [#allocation4], 1 }
 0x1c3   :  { %364 = vsyncpa [#allocation4 + $0x1], 1 }

</bundles_post_ra>
